<compile_context>
chip_gen: v7x
topology: tpu7x:2x2x1
jax: 0.10.0
libtpu: 0.0.40
codegen_flags: <defaults>
</compile_context>

<pallas_src>
import jax
import jax.numpy as jnp
from jax.experimental import pallas as pl
from jax.experimental.pallas import tpu as pltpu

# ---- module hyperparameters (match nn.Module __init__) ----------------------
MAX_REL = 32                        # max_relative_feature
D_IN = 2 * MAX_REL + 1 + 1          # = 66, one-hot width
NUM_EMB = 16                        # num_embeddings

P = 8                               # logical rows packed per 128-lane output row
K_DIM = P * D_IN                    # 528  (block-diagonal contraction dim)
N_DIM = P * NUM_EMB                 # 128  (lane-dense output width)
TILE_R_MAX = 512                    # packed rows per grid step (= 4096 logical rows)


def _round_up(x, m):
    return ((x + m - 1) // m) * m


def _pe_kernel(off_ref, mask_ref, w_ref, out_ref):
    # off_ref / mask_ref: (tile_r, 8) int32
    # w_ref: (528, 128) f32 block-diagonal weight (bias folded in)
    # out_ref: (tile_r, 128) f32
    off = off_ref[...]
    msk = mask_ref[...]
    d = jnp.clip(off + MAX_REL, 0, 2 * MAX_REL) * msk + (1 - msk) * (2 * MAX_REL + 1)

    rows = off.shape[0]
    lane = jax.lax.broadcasted_iota(jnp.int32, (rows, K_DIM), 1)

    # Build the packed one-hot: sub-row j hits lane j*66 + d[:, j].
    hit = None
    for j in range(P):
        tj = d[:, j:j + 1] + j * D_IN            # (tile_r, 1)
        cmp = lane == tj                         # (tile_r, 528) bool
        hit = cmp if hit is None else jnp.logical_or(hit, cmp)
    onehot = hit.astype(jnp.float32)             # (tile_r, 528)

    out_ref[...] = jnp.dot(onehot, w_ref[...], preferred_element_type=jnp.float32)


def positional_encodings(offset, mask, weight, bias):
    """offset, mask: int [B, L, K]; weight: [NUM_EMB, D_IN]; bias: [NUM_EMB].
    Returns float32 [B, L, K, NUM_EMB]."""
    B, L, K = offset.shape
    N = B * L * K

    # Fold bias into every weight column (each one-hot row has exactly one 1),
    # then build the block-diagonal (528, 128) weight for lane-dense packing.
    w_fold = weight.T.astype(jnp.float32) + bias.astype(jnp.float32)[None, :]  # (66, 16)
    w_bd = jnp.kron(jnp.eye(P, dtype=jnp.float32), w_fold)                     # (528, 128)

    # Tile sizing: big tiles for overhead amortization, but keep >=2 grid
    # blocks when the input is small (megacore), and pad rows to a multiple.
    r_total = -(-N // P)                                     # packed rows (ceil)
    tile_r = min(TILE_R_MAX, _round_up(max(r_total // 2, 1), 8))
    grid_r = -(-r_total // tile_r)
    r_pad = grid_r * tile_r
    n_pad = r_pad * P

    off1 = offset.reshape(-1).astype(jnp.int32)
    msk1 = mask.reshape(-1).astype(jnp.int32)
    pad = n_pad - N
    off2 = jnp.pad(off1, (0, pad)).reshape(r_pad, P)         # padded rows: mask=0 -> d=65
    msk2 = jnp.pad(msk1, (0, pad)).reshape(r_pad, P)

    out = pl.pallas_call(
        _pe_kernel,
        out_shape=jax.ShapeDtypeStruct((r_pad, N_DIM), jnp.float32),
        grid_spec=pltpu.PrefetchScalarGridSpec(
            num_scalar_prefetch=0,
            grid=(grid_r,),
            in_specs=[
                pl.BlockSpec((tile_r, P), lambda i: (i, 0)),        # offsets
                pl.BlockSpec((tile_r, P), lambda i: (i, 0)),        # mask
                pl.BlockSpec((K_DIM, N_DIM), lambda i: (0, 0)),     # block-diag weight
            ],
            out_specs=pl.BlockSpec((tile_r, N_DIM), lambda i: (i, 0)),
        ),
        compiler_params=pltpu.CompilerParams(
            dimension_semantics=("parallel",),
            vmem_limit_bytes=32 * 1024 * 1024,
        ),
    )(off2, msk2, w_bd)

    # (r_pad, 128) row-major == (n_pad, 16) row-major: pure view, then slice.
    return out.reshape(n_pad, NUM_EMB)[:N].reshape(B, L, K, NUM_EMB)


def positional_encodings_ref(offset, mask, weight, bias):
    """Pure-JAX reference reproducing the PyTorch forward exactly."""
    d = (
        jnp.clip(offset + MAX_REL, 0, 2 * MAX_REL) * mask
        + (1 - mask) * (2 * MAX_REL + 1)
    )
    d_onehot = jax.nn.one_hot(d, D_IN, dtype=jnp.float32)
    return d_onehot @ weight.T.astype(jnp.float32) + bias.astype(jnp.float32)


if __name__ == "__main__":
    key = jax.random.PRNGKey(0)
    k_data, k_w, k_b = jax.random.split(key, 3)

    # Deterministic nn.Linear-style parameters (uniform, bound = 1/sqrt(fan_in))
    bound = 1.0 / (D_IN ** 0.5)
    weight = jax.random.uniform(k_w, (NUM_EMB, D_IN), jnp.float32, -bound, bound)
    bias = jax.random.uniform(k_b, (NUM_EMB,), jnp.float32, -bound, bound)

    # Two small cases: one that needs row padding (N=210) and one that tiles
    # evenly (N=256); both produce a multi-block grid (exercises index_maps).
    for (B, L, K) in [(2, 15, 7), (2, 16, 8)]:
        k_case = jax.random.fold_in(k_data, B * L * K)
        k_off, k_mask = jax.random.split(k_case, 2)
        offset = jax.random.randint(k_off, (B, L, K), -64, 64, dtype=jnp.int32)
        mask = jax.random.randint(k_mask, (B, L, K), 0, 2, dtype=jnp.int32)

        E_kernel = jax.block_until_ready(
            positional_encodings(offset, mask, weight, bias)
        )
        E_ref = positional_encodings_ref(offset, mask, weight, bias)

        assert E_kernel.shape == (B, L, K, NUM_EMB)
        max_diff = float(jnp.max(jnp.abs(E_kernel - E_ref)))
        assert jnp.allclose(E_kernel, E_ref, atol=1e-5, rtol=1e-5), (
            f"mismatch for shape {(B, L, K)}: max abs diff {max_diff}"
        )

    print("KERNEL_OK")
</pallas_src>

<mosaic_0001>
module attributes {stable_mosaic.version = 11 : i64} {
  func.func @_pe_kernel(%arg0: i32, %arg1: memref<16x8xi32, #tpu.memory_space<vmem>>, %arg2: memref<16x8xi32, #tpu.memory_space<vmem>>, %arg3: memref<528x128xf32, #tpu.memory_space<vmem>>, %arg4: memref<16x128xf32, #tpu.memory_space<vmem>>) attributes {dimension_semantics = [#tpu.dimension_semantics<parallel>], iteration_bounds = array<i64: 2>, scalar_prefetch = 0 : i64, scratch_operands = 0 : i64, tpu.core_type = #tpu.core_type<tc>, window_params = [{transform_indices = @transform_0, window_bounds = array<i64: 16, 8>}, {transform_indices = @transform_1, window_bounds = array<i64: 16, 8>}, {pipeline_mode = #tpu.pipeline_mode<synchronous>, transform_indices = @transform_2, window_bounds = array<i64: 528, 128>}, {transform_indices = @transform_3, window_bounds = array<i64: 16, 128>}]} {
    %c0 = arith.constant 0 : index
    %c0_0 = arith.constant 0 : index
    %0 = vector.load %arg1[%c0, %c0_0] : memref<16x8xi32, #tpu.memory_space<vmem>>, vector<16x8xi32>
    %c0_1 = arith.constant 0 : index
    %c0_2 = arith.constant 0 : index
    %1 = vector.load %arg2[%c0_1, %c0_2] : memref<16x8xi32, #tpu.memory_space<vmem>>, vector<16x8xi32>
    %c32_i32 = arith.constant 32 : i32
    %2 = vector.broadcast %c32_i32 : i32 to vector<16x8xi32>
    %3 = arith.addi %0, %2 : vector<16x8xi32>
    %c0_i32 = arith.constant 0 : i32
    %c64_i32 = arith.constant 64 : i32
    %4 = vector.broadcast %c0_i32 : i32 to vector<16x8xi32>
    %5 = arith.maxsi %4, %3 : vector<16x8xi32>
    %6 = vector.broadcast %c64_i32 : i32 to vector<16x8xi32>
    %7 = arith.minsi %6, %5 : vector<16x8xi32>
    %8 = arith.muli %7, %1 : vector<16x8xi32>
    %c1_i32 = arith.constant 1 : i32
    %9 = vector.broadcast %c1_i32 : i32 to vector<16x8xi32>
    %10 = arith.subi %9, %1 : vector<16x8xi32>
    %c65_i32 = arith.constant 65 : i32
    %11 = vector.broadcast %c65_i32 : i32 to vector<16x8xi32>
    %12 = arith.muli %10, %11 : vector<16x8xi32>
    %13 = arith.addi %8, %12 : vector<16x8xi32>
    %14 = tpu.iota {dimensions = array<i32: 1>} : vector<16x528xi32>
    %15 = vector.extract_strided_slice %13 {offsets = [0, 0], sizes = [16, 1], strides = [1, 1]} : vector<16x8xi32> to vector<16x1xi32>
    %c0_i32_3 = arith.constant 0 : i32
    %16 = vector.broadcast %c0_i32_3 : i32 to vector<16x1xi32>
    %17 = arith.addi %15, %16 : vector<16x1xi32>
    %18 = vector.broadcast %17 : vector<16x1xi32> to vector<16x528xi32>
    %19 = arith.cmpi eq, %14, %18 : vector<16x528xi32>
    %20 = vector.extract_strided_slice %13 {offsets = [0, 1], sizes = [16, 1], strides = [1, 1]} : vector<16x8xi32> to vector<16x1xi32>
    %c66_i32 = arith.constant 66 : i32
    %21 = vector.broadcast %c66_i32 : i32 to vector<16x1xi32>
    %22 = arith.addi %20, %21 : vector<16x1xi32>
    %23 = vector.broadcast %22 : vector<16x1xi32> to vector<16x528xi32>
    %24 = arith.cmpi eq, %14, %23 : vector<16x528xi32>
    %25 = arith.ori %19, %24 : vector<16x528xi1>
    %26 = vector.extract_strided_slice %13 {offsets = [0, 2], sizes = [16, 1], strides = [1, 1]} : vector<16x8xi32> to vector<16x1xi32>
    %c132_i32 = arith.constant 132 : i32
    %27 = vector.broadcast %c132_i32 : i32 to vector<16x1xi32>
    %28 = arith.addi %26, %27 : vector<16x1xi32>
    %29 = vector.broadcast %28 : vector<16x1xi32> to vector<16x528xi32>
    %30 = arith.cmpi eq, %14, %29 : vector<16x528xi32>
    %31 = arith.ori %25, %30 : vector<16x528xi1>
    %32 = vector.extract_strided_slice %13 {offsets = [0, 3], sizes = [16, 1], strides = [1, 1]} : vector<16x8xi32> to vector<16x1xi32>
    %c198_i32 = arith.constant 198 : i32
    %33 = vector.broadcast %c198_i32 : i32 to vector<16x1xi32>
    %34 = arith.addi %32, %33 : vector<16x1xi32>
    %35 = vector.broadcast %34 : vector<16x1xi32> to vector<16x528xi32>
    %36 = arith.cmpi eq, %14, %35 : vector<16x528xi32>
    %37 = arith.ori %31, %36 : vector<16x528xi1>
    %38 = vector.extract_strided_slice %13 {offsets = [0, 4], sizes = [16, 1], strides = [1, 1]} : vector<16x8xi32> to vector<16x1xi32>
    %c264_i32 = arith.constant 264 : i32
    %39 = vector.broadcast %c264_i32 : i32 to vector<16x1xi32>
    %40 = arith.addi %38, %39 : vector<16x1xi32>
    %41 = vector.broadcast %40 : vector<16x1xi32> to vector<16x528xi32>
    %42 = arith.cmpi eq, %14, %41 : vector<16x528xi32>
    %43 = arith.ori %37, %42 : vector<16x528xi1>
    %44 = vector.extract_strided_slice %13 {offsets = [0, 5], sizes = [16, 1], strides = [1, 1]} : vector<16x8xi32> to vector<16x1xi32>
    %c330_i32 = arith.constant 330 : i32
    %45 = vector.broadcast %c330_i32 : i32 to vector<16x1xi32>
    %46 = arith.addi %44, %45 : vector<16x1xi32>
    %47 = vector.broadcast %46 : vector<16x1xi32> to vector<16x528xi32>
    %48 = arith.cmpi eq, %14, %47 : vector<16x528xi32>
    %49 = arith.ori %43, %48 : vector<16x528xi1>
    %50 = vector.extract_strided_slice %13 {offsets = [0, 6], sizes = [16, 1], strides = [1, 1]} : vector<16x8xi32> to vector<16x1xi32>
    %c396_i32 = arith.constant 396 : i32
    %51 = vector.broadcast %c396_i32 : i32 to vector<16x1xi32>
    %52 = arith.addi %50, %51 : vector<16x1xi32>
    %53 = vector.broadcast %52 : vector<16x1xi32> to vector<16x528xi32>
    %54 = arith.cmpi eq, %14, %53 : vector<16x528xi32>
    %55 = arith.ori %49, %54 : vector<16x528xi1>
    %56 = vector.extract_strided_slice %13 {offsets = [0, 7], sizes = [16, 1], strides = [1, 1]} : vector<16x8xi32> to vector<16x1xi32>
    %c462_i32 = arith.constant 462 : i32
    %57 = vector.broadcast %c462_i32 : i32 to vector<16x1xi32>
    %58 = arith.addi %56, %57 : vector<16x1xi32>
    %59 = vector.broadcast %58 : vector<16x1xi32> to vector<16x528xi32>
    %60 = arith.cmpi eq, %14, %59 : vector<16x528xi32>
    %61 = arith.ori %55, %60 : vector<16x528xi1>
    %62 = arith.extui %61 : vector<16x528xi1> to vector<16x528xi32>
    %63 = arith.sitofp %62 : vector<16x528xi32> to vector<16x528xf32>
    %c0_4 = arith.constant 0 : index
    %c0_5 = arith.constant 0 : index
    %64 = vector.load %arg3[%c0_4, %c0_5] : memref<528x128xf32, #tpu.memory_space<vmem>>, vector<528x128xf32>
    %cst = arith.constant dense<0.000000e+00> : vector<16x128xf32>
    %65 = tpu.matmul %63, %64, %cst {dimension_numbers = #tpu.dot_dimension_numbers<[1], [0], [0], [1], [0, 0, 1, 1], [], []>} : vector<16x528xf32>, vector<528x128xf32>, vector<16x128xf32> -> vector<16x128xf32>
    %c0_6 = arith.constant 0 : index
    %c0_7 = arith.constant 0 : index
    %66 = vector.load %arg4[%c0_6, %c0_7] : memref<16x128xf32, #tpu.memory_space<vmem>>, vector<16x128xf32>
    tpu.vector_store %arg4[%c0_6, %c0_7], %65 {strides = array<i32>} : memref<16x128xf32, #tpu.memory_space<vmem>>, vector<16x128xf32>,
    return
  }
  func.func @transform_0(%arg0: i32) -> (i32, i32) {
    %c0_i32 = arith.constant 0 : i32
    %c0_i32_0 = arith.constant 0 : i32
    return %arg0, %c0_i32 : i32, i32
  }
  func.func @transform_1(%arg0: i32) -> (i32, i32) {
    %c0_i32 = arith.constant 0 : i32
    %c0_i32_0 = arith.constant 0 : i32
    return %arg0, %c0_i32 : i32, i32
  }
  func.func @transform_2(%arg0: i32) -> (i32, i32) {
    %c0_i32 = arith.constant 0 : i32
    %c0_i32_0 = arith.constant 0 : i32
    %c0_i32_1 = arith.constant 0 : i32
    return %c0_i32, %c0_i32_0 : i32, i32
  }
  func.func @transform_3(%arg0: i32) -> (i32, i32) {
    %c0_i32 = arith.constant 0 : i32
    %c0_i32_0 = arith.constant 0 : i32
    return %arg0, %c0_i32 : i32, i32
  }
}

</mosaic_0001>

<bundles_post_ra>
// kernel: tpu_custom_call.1
= control target key start
LH: loop header
LB: loop body
LE: loop exit
PB: predicated region body
PF: predicated region fallthrough
CT: control target
= control target key end

     0   :  { %8 = vsyncpa [#allocation3], 0  ;;  %s1694_s0 = inlined_call_operand.vmem [shape: s32[32,8], index: 0, kind: input, shape index: {}]   ;;  %s1695_s1 = inlined_call_operand.vmem [shape: s32[32,8], index: 1, kind: input, shape index: {}]   ;;  %s1696_s2 = inlined_call_operand.hbm [shape: f32[528,128], index: 2, kind: input, shape index: {}]   ;;  %s1697_s3 = inlined_call_operand.hbm [shape: f32[32,128], index: 3, kind: output, shape index: {}]  }
   0x1   :  { %9 = vsyncpa [#allocation4], 0 }
   0x2   :  { %11 = vsyncpa [#allocation4 + $0x1], 0  ;;  %s1263_s12 = smov 0   ;;  %s1265_s13 = smov 0  }
   0x3   :  { %s1267_s14 = smov 0   ;;  %s1269_s15 = smov 0  }
   0x4 LB: > { %s1284_s16 = sadd.s32 4294967295, %s1226_s15   ;;  %s869_s17 = sadd.s32 4294967294, %s1226_s15   ;;  %s1226_s15 = sphi %s1269_s15, %s1728_s15   ;;  %s1222_s14 = sphi %s1267_s14, %s1727_s14   ;;  %s1218_s13 = sphi %s1265_s13, %s1726_s13   ;;  %s1214_s12 = sphi %s1263_s12, %s1725_s12  }
   0x5   : > { %s1288_s18 = sadd.s32 1, %s1226_s15   ;;  %s97_s19 = sadd.s32 1, %s1222_s14 }
   0x6   : > { %s94_s20 = ssub.s32 %s1226_s15, %s1288_s18  ;;  %p107_p0 = scmp.ne.s32.totalorder %s1222_s14, %s1218_s13 }
   0x7   : > { %p95_p1 = scmp.eq.s32.totalorder %s94_s20, 0  ;;  %p108_p2 = scmp.eq.s32.totalorder %s1284_s16, 1 }
   0x8   : > { %p113_p3 = scmp.ne.s32.totalorder %s1218_s13, %s1214_s12  ;;  %p114_p4 = scmp.eq.s32.totalorder %s869_s17, 1 }
   0x9   : > { %s1299_s21 = scalar_select %p95_p1, %s1222_s14, %s97_s19  }
   0xa   : > { %p1301_p5 = por %p108_p2, %p107_p0  ;;  %p1305_p6 = por %p114_p4, %p113_p3 }
   0xb   : > { %p870_p7 = scmp.ge.s32.totalorder %s1226_s15, 1  ;;  %p121_p8 = scmp.lt.s32.totalorder %s1226_s15, 3 }
   0xc   : > { %s1701_s22 = scalar_select %p1301_p5, 1, 0 }
   0xd   : > { %s1702_s23 = scalar_select %p1305_p6, 1, 0 }
   0xe   : > { %p1698_p9 = scmp.eq.s32.totalorder %s1284_s16, 0  ;;  %p1312_p10 = pnand %p870_p7, %p121_p8 }
   0xf   : > { %s1228_s25 = smov [#allocation2]   ;;  %s1132_s30 = scalar_lea.hbm %s1696_s2, 8448 }
  0x10   : > { %s1703_s24 = scalar_select %p1312_p10, 1, 0 }
  0x11   : > { %s133_s26 = sshll.u32 %s1228_s25, 4  ;;  %p1059_p11 = pneg %p1312_p10  ;;  %s134_s26 = int_to_ptr.vmem [resolvable:$true] %s133_s26 }
  0x12   : > { %p1133_p13 = scmp.ne.s32.totalorder %s1696_s2, %s1132_s30  ;;  %p1139_p3 = scmp.lt.u32.totalorder %s1132_s30, %s1696_s2 }
  0x13   : > { %p1320_p12 = pnand %p1698_p9, %p1059_p11 }
  0x15   : > { %p1134_p0 = pneg %p1320_p12 }
  0x17   : > { %p1135_p1 = pnand %p1134_p0, %p1133_p13 }
  0x19   : > { %p1136_p2 = pneg %p1135_p1 }
  0x1b   : > { %p1141_p4 = pnand %p1139_p3, %p1136_p2 }
  0x1d   : > { %1144 = shalt.err (!%p1141_p4)
}
  0x1e   : > { %s1145_s8 = scalar_lea.vmem %s134_s26, 8448  ;;  %p1153_p9 = scmp.lt.s32.totalorder %s134_s26, %s134_s26 }
  0x1f   : > { %p1146_p7 = scmp.ne.s32.totalorder %s134_s26, %s1145_s8  ;;  %p1154_p6 = scmp.lt.s32.totalorder %s1145_s8, %s1145_s8 }
  0x21   : > { %p1148_p8 = pnand %p1146_p7, %p1134_p0  ;;  %p1155_p5 = por %p1154_p6, %p1153_p9 }
  0x23   : > { %p1149_p11 = pneg %p1148_p8 }
  0x25   : > { %p1156_p10 = pnand %p1155_p5, %p1149_p11 }
  0x27   : > { %1159 = shalt.err (!%p1156_p10)
}
  0x28   : > { %s1229_s9 = smov 128   ;;  %s1230_s10 = smov 8  }
  0x29   : > { %1062 = dma.hbm_to_vmem [thread:$0]  (!%p1320_p12), %s1696_s2, 8448, %s134_s26, [#allocation3], %s1229_s9, %s1229_s9, %s1230_s10  }
  0x2a   : > { %p1705_p13 = scmp.ne.s32.totalorder %s1703_s24, 0 }
  0x2b   : > { %p1706_p1 = scmp.eq.s32.totalorder (!%p1705_p13), %s1284_s16, 0 }
  0x2c   : > { %167 = sbr.rel (%p1705_p13) target bundleno = 512 (0x200), region = 32 }
  0x33   : > { %1205 = dma.done.wait (%p1706_p1), [#allocation3], 8448   ;;  %p1707_p0 = pmov %p1706_p1 }
  0x34   : > { %s876_s19 = sshll.u32 %s1284_s16, 1  ;;  %v1231_v0 = vmov 0   ;;  %v1232_v1 = vmov 2   ;;  %v485_v9 = vld [vmem:[#allocation2 + $0x80] sm:$0xff]  ;;  %v486_v10 = vld [vmem:[#allocation2 + $0x88] sm:$0xff]  ;;  %v487_v32 = vld [vmem:[#allocation2 + $0x90] sm:$0xff] }
  0x35   : > { %1207 = vsyncadd (%p1707_p0), [#allocation3], 4294958848  ;;  %1116 = vset.pattern.permute.xlu0 %v1231_v0  ;;  %p197_p5 = scmp.lt.s32.totalorder %s876_s19, 3  ;;  %1118 = vset.pattern.permute.xlu1 %v1232_v1  ;;  %v985_v12 = vpack.c.bf16 %v486_v10, %v485_v9  ;;  %v517_v13 = vld [vmem:[#allocation2 + $0x180] sm:$0xff]  ;;  %v518_v14 = vld [vmem:[#allocation2 + $0x188] sm:$0xff]  ;;  %v1233_v50 = vmov 3  }
  0x36   : > { %v1017_v15 = vpack.c.bf16 %v518_v14, %v517_v13  ;;  %v469_v25 = vld [vmem:[#allocation2] sm:$0xff]  ;;  %v470_v26 = vld [vmem:[#allocation2 + $0x8] sm:$0xff]  ;;  %v488_v33 = vld [vmem:[#allocation2 + $0x98] sm:$0xff]  ;;  %v1234_v59 = vmov 1   ;;  %s193_s30 = sand.u32 1, %s1218_s13   ;;  %s897_s7 = sshll.u32 %s1284_s16, 8 }
  0x37   : > { %s1730_s19 = smov (!%p197_p5, %s876_s19), 3  ;;  %986 = vmatprep.subr.bf16.mxu0 %v985_v12  ;;  %v987_v27 = vpack.c.bf16 %v470_v26, %v469_v25  ;;  %v501_v30 = vld [vmem:[#allocation2 + $0x100] sm:$0xff]  ;;  %v502_v31 = vld [vmem:[#allocation2 + $0x108] sm:$0xff]  ;;  %v519_v34 = vld [vmem:[#allocation2 + $0x190] sm:$0xff]  ;;  %v989_v38 = vpack.c.bf16 %v488_v33, %v487_v32  ;;  %s875_s4 = sshll.u32 %s193_s30, 4 }
  0x38   : > { %s877_s20 = sshll.u32 %s1730_s19, 3  ;;  %1018 = vmatprep.subr.bf16.mxu1 %v1017_v15  ;;  %v520_v35 = vld [vmem:[#allocation2 + $0x198] sm:$0xff]  ;;  %v1019_v37 = vpack.c.bf16 %v502_v31, %v501_v30  ;;  %v471_v39 = vld [vmem:[#allocation2 + $0x10] sm:$0xff]  ;;  %v489_v47 = vld [vmem:[#allocation2 + $0xa0] sm:$0xff]  ;;  %s195_s5 = scalar_lea.vmem [#allocation5], %s875_s4 }
  0x39   : > { %s200_s24 = scalar_lea.vmem %s1694_s0, %s877_s20  ;;  %s206_s29 = scalar_lea.vmem %s1695_s1, %s877_s20  ;;  %988 = vmatpush3.bf16.msra.mxu0 %v987_v27  ;;  %v472_v40 = vld [vmem:[#allocation2 + $0x18] sm:$0xff]  ;;  %v503_v41 = vld [vmem:[#allocation2 + $0x110] sm:$0xff]  ;;  %v1021_v42 = vpack.c.bf16 %v520_v35, %v519_v34  ;;  %v490_v48 = vld [vmem:[#allocation2 + $0xa8] sm:$0xff] }
  0x3a   : > { %v209_v2 = vld [vmem:[%s200_s24] sm:$0xff]  ;;  %v210_v4 = vld [vmem:[%s200_s24 + $0x8] sm:$0xff]  ;;  %v991_v43 = vpack.c.bf16 %v472_v40, %v471_v39  ;;  %v504_v44 = vld [vmem:[#allocation2 + $0x118] sm:$0xff]  ;;  %1020 = vmatpush3.bf16.msra.mxu1 %v1019_v37  ;;  %990 = vmatprep.subr.bf16.mxu0 %v989_v38  ;;  %v993_v51 = vpack.c.bf16 %v490_v48, %v489_v47  ;;  %s783_s6 = sshll.u32 %s195_s5, 4  ;;  %s1651_s10 = scalar_lea.hbm %s1697_s3, %s897_s7  ;;  %s1646_s6 = int_to_ptr.vmem [resolvable:$true] %s783_s6 }
  0x3b   : > { %v211_v3 = vld [vmem:[%s206_s29] sm:$0xff]  ;;  %v213_v5 = vadd.s32 32, %v209_v2  ;;  %v212_v7 = vld [vmem:[%s206_s29 + $0x8] sm:$0xff]  ;;  %v214_v8 = vadd.s32 32, %v210_v4  ;;  %v1023_v46 = vpack.c.bf16 %v504_v44, %v503_v41  ;;  %1022 = vmatprep.subr.bf16.mxu1 %v1021_v42  ;;  %v491_v62 = vld [vmem:[#allocation2 + $0xb0] sm:$0xff]  ;;  %v1237_v42 = vmov 5  }
  0x3c   : > { %v225_v6 = vsub.s32 1, %v211_v3  ;;  %v226_v11 = vsub.s32 1, %v212_v7  ;;  %v521_v49 = vld [vmem:[#allocation2 + $0x1a0] sm:$0xff]  ;;  %v522_v52 = vld [vmem:[#allocation2 + $0x1a8] sm:$0xff]  ;;  %v492_v63 = vld [vmem:[#allocation2 + $0xb8] sm:$0xff]  ;;  %s1653_s11 = scalar_lea.sflag [#allocation4], %s193_s30 }
  0x3d   : > { %vm215_vm0 = vcmp.gt.s32.totalorder %v213_v5, 0  ;;  %vm217_vm1 = vcmp.gt.s32.totalorder %v214_v8, 0  ;;  %v473_v53 = vld [vmem:[#allocation2 + $0x20] sm:$0xff]  ;;  %v474_v54 = vld [vmem:[#allocation2 + $0x28] sm:$0xff]  ;;  %992 = vmatpush3.bf16.msra.mxu0 %v991_v43  ;;  %v1025_v55 = vpack.c.bf16 %v522_v52, %v521_v49  ;;  %v523_v0 = vld [vmem:[#allocation2 + $0x1b0] sm:$0xff]  ;;  %s1160_s17 = scalar_lea.vmem %s1646_s6, 256 }
  0x3e   : > { %v216_v16 = vsel %vm215_vm0, %v213_v5, 0  ;;  %v218_v17 = vsel %vm217_vm1, %v214_v8, 0  ;;  %v227_v18 = vmul.u32 65, %v225_v6  ;;  %v228_v21 = vmul.u32 65, %v226_v11  ;;  %v505_v57 = vld [vmem:[#allocation2 + $0x120] sm:$0xff]  ;;  %v506_v58 = vld [vmem:[#allocation2 + $0x128] sm:$0xff]  ;;  %994 = vmatprep.subr.bf16.mxu0 %v993_v51  ;;  %1024 = vmatpush3.bf16.msra.mxu1 %v1023_v46  ;;  %p1161_p6 = scmp.ne.s32.totalorder %s1646_s6, %s1160_s17 }
  0x3f   : > { %vm219_vm2 = vcmp.lt.s32.totalorder %v216_v16, 64  ;;  %vm221_vm3 = vcmp.lt.s32.totalorder %v218_v17, 64  ;;  %v995_v56 = vpack.c.bf16 %v474_v54, %v473_v53  ;;  %v1027_v61 = vpack.c.bf16 %v506_v58, %v505_v57  ;;  %1026 = vmatprep.subr.bf16.mxu1 %v1025_v55  ;;  %v524_v4 = vld [vmem:[#allocation2 + $0x1b8] sm:$0xff]  ;;  %v475_v5 = vld [vmem:[#allocation2 + $0x30] sm:$0xff]  ;;  %v493_v12 = vld [vmem:[#allocation2 + $0xc0] sm:$0xff]  ;;  %p1723_p9 = scmp.ne.s32.totalorder %s1701_s22, 0 }
  0x40   : > { %v220_v19 = vsel %vm219_vm2, %v216_v16, 64  ;;  %v222_v20 = vsel %vm221_vm3, %v218_v17, 64  ;;  %v476_v6 = vld [vmem:[#allocation2 + $0x38] sm:$0xff]  ;;  %v1029_v8 = vpack.c.bf16 %v524_v4, %v523_v0  ;;  %v507_v10 = vld [vmem:[#allocation2 + $0x130] sm:$0xff]  ;;  %v494_v13 = vld [vmem:[#allocation2 + $0xc8] sm:$0xff]  ;;  %v1238_v53 = vmov 6  }
  0x41   : > { %v223_v22 = vmul.u32 %v220_v19, %v211_v3  ;;  %v224_v23 = vmul.u32 %v222_v20, %v212_v7  ;;  %v997_v3 = vpack.c.bf16 %v492_v63, %v491_v62  ;;  %v1235_v7 = vmov 4   ;;  %996 = vmatpush3.bf16.msra.mxu0 %v995_v56  ;;  %v508_v11 = vld [vmem:[#allocation2 + $0x138] sm:$0xff]  ;;  %v525_v14 = vld [vmem:[#allocation2 + $0x1c0] sm:$0xff]  ;;  %v526_v15 = vld [vmem:[#allocation2 + $0x1c8] sm:$0xff]  ;;  %p1162_p10 = pnand %p1161_p6, %p1723_p9  ;;  %s1240_s16 = smov [#allocation5]  }
  0x42   : > { %v999_v9 = vpack.c.bf16 %v476_v6, %v475_v5  ;;  %1028 = vmatpush3.bf16.msra.mxu1 %v1027_v61  ;;  %v1031_v17 = vpack.c.bf16 %v508_v11, %v507_v10  ;;  %v1033_v19 = vpack.c.bf16 %v526_v15, %v525_v14  ;;  %v510_v26 = vld [vmem:[#allocation2 + $0x148] sm:$0xff]  ;;  %v495_v30 = vld [vmem:[#allocation2 + $0xd0] sm:$0xff]  ;;  %v496_v31 = vld [vmem:[#allocation2 + $0xd8] sm:$0xff]  ;;  %s1164_s19 = sshll.u32 %s1240_s16, 4  ;;  %s1165_s19 = int_to_ptr.vmem [resolvable:$false] %s1164_s19 }
  0x43   : > { %v1354_v24 = vadd.s32 %v227_v18, %v223_v22  ;;  %v1358_v29 = vadd.s32 %v228_v21, %v224_v23  ;;  %998 = vmatprep.subr.bf16.mxu0 %v997_v3  ;;  %v1001_v18 = vpack.c.bf16 %v494_v13, %v493_v12  ;;  %1030 = vmatprep.subr.bf16.mxu1 %v1029_v8  ;;  %v477_v21 = vld [vmem:[#allocation2 + $0x40] sm:$0xff]  ;;  %v478_v22 = vld [vmem:[#allocation2 + $0x48] sm:$0xff]  ;;  %v527_v32 = vld [vmem:[#allocation2 + $0x1d0] sm:$0xff]  ;;  %p1163_p12 = pneg %p1162_p10  ;;  %s1166_s20 = scalar_lea.vmem %s1165_s19, 512 }
  0x44   : > { %v509_v23 = vld [vmem:[#allocation2 + $0x140] sm:$0xff]  ;;  %v1003_v25 = vpack.c.bf16 %v478_v22, %v477_v21  ;;  %v1005_v33 = vpack.c.bf16 %v496_v31, %v495_v30  ;;  %v528_v34 = vld [vmem:[#allocation2 + $0x1d8] sm:$0xff]  ;;  %v479_v35 = vld [vmem:[#allocation2 + $0x50] sm:$0xff]  ;;  %p1167_p2 = scmp.lt.s32.totalorder %s1646_s6, %s1165_s19  ;;  %p1168_p3 = scmp.lt.s32.totalorder %s1166_s20, %s1160_s17 }
  0x45   : > { %238 = vperm.xlu0 %1116, %v1354_v24   ;;  %v281_v28 = vadd.s32 132, %v1354_v24  ;;  %v309_v36 = vadd.s32 198, %v1354_v24  ;;  %v253_v45 = vadd.s32 66, %v1354_v24  ;;  %v337_v60 = vadd.s32 264, %v1354_v24  ;;  %1000 = vmatpush3.bf16.msra.mxu0 %v999_v9  ;;  %v511_v40 = vld [vmem:[#allocation2 + $0x150] sm:$0xff]  ;;  %v512_v41 = vld [vmem:[#allocation2 + $0x158] sm:$0xff] }
  0x46   : > { %v282_v2 = vadd.s32 132, %v1358_v29  ;;  %v254_v16 = vadd.s32 66, %v1358_v29  ;;  %v421_v20 = vadd.s32 462, %v1354_v24  ;;  %1002 = vmatprep.subr.bf16.mxu0 %v1001_v18  ;;  %1032 = vmatpush3.bf16.msra.mxu1 %v1031_v17  ;;  %v1035_v27 = vpack.c.bf16 %v510_v26, %v509_v23  ;;  %v497_v44 = vld [vmem:[#allocation2 + $0xe0] sm:$0xff]  ;;  %v530_v48 = vld [vmem:[#allocation2 + $0x1e8] sm:$0xff]  ;;  %v531_v61 = vld [vmem:[#allocation2 + $0x1f0] sm:$0xff]  ;;  %p1169_p4 = por %p1168_p3, %p1167_p2 }
  0x47   : > { %284 = vperm.xlu1 %1118, %v281_v28   ;;  %v1236_v28 = vmov 7   ;;  %1034 = vmatprep.subr.bf16.mxu1 %v1033_v19  ;;  %v394_v37 = vadd.s32 396, %v1358_v29  ;;  %v1037_v38 = vpack.c.bf16 %v528_v34, %v527_v32  ;;  %v1039_v43 = vpack.c.bf16 %v512_v41, %v511_v40  ;;  %v529_v46 = vld [vmem:[#allocation2 + $0x1e0] sm:$0xff]  ;;  %v482_v51 = vld [vmem:[#allocation2 + $0x68] sm:$0xff]  ;;  %v483_v63 = vld [vmem:[#allocation2 + $0x70] sm:$0xff] }
  0x48   : > { %v481_v49 = vld [vmem:[#allocation2 + $0x60] sm:$0xff]  ;;  %v393_v52 = vadd.s32 396, %v1354_v24  ;;  %v1041_v54 = vpack.c.bf16 %v530_v48, %v529_v46  ;;  %v514_v56 = vld [vmem:[#allocation2 + $0x168] sm:$0xff]  ;;  %v484_v0 = vld [vmem:[#allocation2 + $0x78] sm:$0xff]  ;;  %v338_v9 = vadd.s32 264, %v1358_v29  ;;  %v366_v10 = vadd.s32 330, %v1358_v29  ;;  %p1170_p7 = pnand %p1169_p4, %p1163_p12 }
  0x49   : > { %241 = vperm.xlu0 %1116, %v1358_v29   ;;  %1004 = vmatpush3.bf16.msra.mxu0 %v1003_v25  ;;  %v513_v55 = vld [vmem:[#allocation2 + $0x160] sm:$0xff]  ;;  %v1011_v57 = vpack.c.bf16 %v482_v51, %v481_v49  ;;  %v1015_v4 = vpack.c.bf16 %v484_v0, %v483_v63  ;;  %v515_v5 = vld [vmem:[#allocation2 + $0x170] sm:$0xff]  ;;  %v516_v6 = vld [vmem:[#allocation2 + $0x178] sm:$0xff]  ;;  %v422_v11 = vadd.s32 462, %v1358_v29  ;;  %v1239_v32 = vmov 0.0  }
  0x4a   : > { %1036 = vmatpush3.bf16.msra.mxu1 %v1035_v27  ;;  %1006 = vmatprep.subr.bf16.mxu0 %v1005_v33  ;;  %v1043_v58 = vpack.c.bf16 %v514_v56, %v513_v55  ;;  %v1047_v8 = vpack.c.bf16 %v516_v6, %v515_v5  ;;  %v533_v12 = vld [vmem:[#allocation2 + $0x200] sm:$0xff]  ;;  %v534_v13 = vld [vmem:[#allocation2 + $0x208] sm:$0xff] }
  0x4b   : > { %1119 = vset.pattern.permute.xlu1 %v1233_v50  ;;  %1038 = vmatprep.subr.bf16.mxu1 %v1037_v38  ;;  %v1381_v14 = vpack.c.bf16 %v534_v13, %v533_v12 }
  0x4c   : > { %312 = vperm.xlu1 %1119, %v309_v36   ;;  %v480_v36 = vld [vmem:[#allocation2 + $0x58] sm:$0xff] }
  0x4d   : > { %1117 = vset.pattern.permute.xlu0 %v1234_v59  ;;  %v1007_v39 = vpack.c.bf16 %v480_v36, %v479_v35 }
  0x4e   : > { %256 = vperm.xlu0 %1117, %v253_v45   ;;  %v498_v45 = vld [vmem:[#allocation2 + $0xe8] sm:$0xff]  ;;  %1040 = vmatpush3.bf16.msra.mxu1 %v1039_v43 }
  0x4f   : > { %v1009_v47 = vpack.c.bf16 %v498_v45, %v497_v44  ;;  %1008 = vmatpush3.bf16.msra.mxu0 %v1007_v39  ;;  %1042 = vmatprep.subr.bf16.mxu1 %v1041_v54 }
  0x50   : > { %1120 = vset.pattern.permute.xlu1 %v1235_v7 }
  0x51   : > { %340 = vperm.xlu1 %1120, %v337_v60   ;;  %1010 = vmatprep.subr.bf16.mxu0 %v1009_v47  ;;  %v500_v60 = vld [vmem:[#allocation2 + $0xf8] sm:$0xff]  ;;  %v1718_v47 = vmov 0 }
  0x52   : > { %1123 = vset.pattern.permute.xlu0 %v1232_v1  ;;  %v365_v1 = vadd.s32 330, %v1354_v24  ;;  %v532_v24 = vld [vmem:[#allocation2 + $0x1f8] sm:$0xff]  ;;  %1044 = vmatpush3.bf16.msra.mxu1 %v1043_v58 }
  0x53   : > { %287 = vperm.xlu0 %1123, %v282_v2   ;;  %v310_v2 = vadd.s32 198, %v1358_v29  ;;  %1012 = vmatpush3.bf16.msra.mxu0 %v1011_v57  ;;  %v1045_v3 = vpack.c.bf16 %v532_v24, %v531_v61 }
  0x55   : > { %1121 = vset.pattern.permute.xlu1 %v1234_v59  ;;  %v499_v59 = vld [vmem:[#allocation2 + $0xf0] sm:$0xff]  ;;  %1046 = vmatprep.subr.bf16.mxu1 %v1045_v3 }
  0x56   : > { %259 = vperm.xlu1 %1121, %v254_v16   ;;  %v1013_v62 = vpack.c.bf16 %v500_v60, %v499_v59  ;;  %1048 = vmatpush3.bf16.msra.mxu1 %v1047_v8 }
  0x57   : > { %1126 = vset.pattern.permute.xlu0 %v1236_v28 }
  0x58   : > { %424 = vperm.xlu0 %1126, %v421_v20   ;;  %1014 = vmatprep.subr.bf16.mxu0 %v1013_v62 }
  0x59   : > { %1016 = vmatpush3.bf16.msra.mxu0 %v1015_v4 }
  0x5a   : > { %1122 = vset.pattern.permute.xlu1 %v1237_v42  ;;  %1050 = vmatprep.subr.bf16.mxu0 %v1381_v14 }
  0x5b   : > { %368 = vperm.xlu1 %1122, %v365_v1  }
  0x5c   : > { %1129 = vset.pattern.permute.xlu0 %v1238_v53 }
  0x5d   : > { %399 = vperm.xlu0 %1129, %v394_v37  }
  0x5f   : > { %1124 = vset.pattern.permute.xlu1 %v1238_v53 }
  0x60   : > { %396 = vperm.xlu1 %1124, %v393_v52  }
  0x61   : > { %1131 = vset.pattern.permute.xlu0 %v1236_v28 }
  0x64   : > { %1125 = vset.pattern.permute.xlu1 %v1233_v50  ;;  %v231_v50 = vlaneseq }
  0x65   : > { %315 = vperm.xlu1 %1125, %v310_v2  }
  0x66   : > { %v1389_v16 = vand.u32 127, %v231_v50 }
  0x68   : > { %v1394_v29 = vadd.s32 128, %v1389_v16  ;;  %v1405_v20 = vadd.s32 384, %v1389_v16  ;;  %v1466_v30 = vadd.s32 512, %v1389_v16  ;;  %v1473_v31 = vadd.s32 256, %v1389_v16 }
  0x69   : > { %1127 = vset.pattern.permute.xlu1 %v1235_v7 }
  0x6a   : > { %343 = vperm.xlu1 %1127, %v338_v9  }
  0x6e   : > { %1128 = vset.pattern.permute.xlu1 %v1237_v42 }
  0x6f   : > { %371 = vperm.xlu1 %1128, %v366_v10  }
  0x73   : > { %1130 = vset.pattern.permute.xlu1 %v1236_v28 }
  0x74   : > { %427 = vperm.xlu1 %1130, %v422_v11  }
  0xc4   : > { %v1385_v15 = vpop.permute.xlu0 %238 }
  0xc5   : > { %vm244_vm4 = vcmp.eq.s32.totalorder %v1394_v29, %v1385_v15  ;;  %vm246_vm9 = vcmp.eq.s32.totalorder %v1405_v20, %v1385_v15 }
  0xc6   : > { %v1387_v7 = vpop.permute.xlu1 %284 }
  0xc7   : > { %vm290_vm7 = vcmp.eq.s32.totalorder %v1394_v29, %v1387_v7  ;;  %vm292_vm14 = vcmp.eq.s32.totalorder %v1405_v20, %v1387_v7 }
  0xc8   : > { %v1391_v17 = vpop.permute.xlu0 %241 }
  0xcb   : > { %v1396_v18 = vpop.permute.xlu1 %312 }
  0xcc   : > { %vm318_vm11 = vcmp.eq.s32.totalorder %v1394_v29, %v1396_v18  ;;  %vm320_vm1 = vcmp.eq.s32.totalorder %v1405_v20, %v1396_v18 }
  0xcd   : > { %v1398_v19 = vpop.permute.xlu0 %256 }
  0xce   : > { %vm262_vm5 = vcmp.eq.s32.totalorder %v1394_v29, %v1398_v19  ;;  %vm264_vm10 = vcmp.eq.s32.totalorder %v1405_v20, %v1398_v19 }
  0xcf   : > { %vm272_vm6 = vmor %vm244_vm4, %vm262_vm5  ;;  %vm243_vm4 = vcmp.eq.s32.totalorder %v1389_v16, %v1385_v15  ;;  %vm261_vm5 = vcmp.eq.s32.totalorder %v1389_v16, %v1398_v19 }
  0xd0   : > { %v1407_v21 = vpop.permute.xlu1 %340  ;;  %vm300_vm8 = vmor %vm272_vm6, %vm290_vm7 }
  0xd1   : > { %vm328_vm12 = vmor %vm300_vm8, %vm318_vm11  ;;  %vm346_vm15 = vcmp.eq.s32.totalorder %v1394_v29, %v1407_v21  ;;  %vm348_vm3 = vcmp.eq.s32.totalorder %v1405_v20, %v1407_v21  ;;  %vm289_vm8 = vcmp.eq.s32.totalorder %v1389_v16, %v1387_v7 }
  0xd2   : > { %vm274_vm13 = vmor %vm246_vm9, %vm264_vm10  ;;  %v1431_v23 = vpop.permute.xlu0 %287 }
  0xd3   : > { %vm302_vm0 = vmor %vm274_vm13, %vm292_vm14 }
  0xd4   : > { %vm330_vm2 = vmor %vm302_vm0, %vm320_vm1  ;;  %vm317_vm0 = vcmp.eq.s32.totalorder %v1389_v16, %v1396_v18 }
  0xd5   : > { %v1419_v22 = vpop.permute.xlu1 %259  ;;  %vm356_vm6 = vmor %vm328_vm12, %vm346_vm15  ;;  %vm345_vm12 = vcmp.eq.s32.totalorder %v1389_v16, %v1407_v21 }
  0xd6   : > { %vm358_vm7 = vmor %vm330_vm2, %vm348_vm3 }
  0xd7   : > { %vm271_vm9 = vmor %vm243_vm4, %vm261_vm5  ;;  %v1441_v26 = vpop.permute.xlu0 %424 }
  0xd8   : > { %vm299_vm13 = vmor %vm271_vm9, %vm289_vm8  ;;  %vm430_vm3 = vcmp.eq.s32.totalorder %v1394_v29, %v1441_v26  ;;  %vm432_vm9 = vcmp.eq.s32.totalorder %v1405_v20, %v1441_v26 }
  0xd9   : > { %vm327_vm2 = vmor %vm299_vm13, %vm317_vm0  ;;  %vm252_vm13 = vcmp.eq.s32.totalorder %v1466_v30, %v1391_v17 }
  0xda   : > { %v1435_v25 = vpop.permute.xlu1 %368  ;;  %vm355_vm4 = vmor %vm327_vm2, %vm345_vm12  ;;  %vm270_vm12 = vcmp.eq.s32.totalorder %v1466_v30, %v1419_v22  ;;  %vm245_vm2 = vcmp.eq.s32.totalorder %v1473_v31, %v1385_v15 }
  0xdb   : > { %vm374_vm10 = vcmp.eq.s32.totalorder %v1394_v29, %v1435_v25  ;;  %vm376_vm11 = vcmp.eq.s32.totalorder %v1405_v20, %v1435_v25  ;;  %vm373_vm1 = vcmp.eq.s32.totalorder %v1389_v16, %v1435_v25 }
  0xdc   : > { %vm384_vm14 = vmor %vm356_vm6, %vm374_vm10  ;;  %v1530_v41 = vpop.permute.xlu0 %399 }
  0xdd   : > { %vm1445_vm15 = vmor %vm358_vm7, %vm376_vm11 }
  0xde   : > { %vm1461_vm7 = vmor %vm355_vm4, %vm373_vm1  ;;  %vm429_vm1 = vcmp.eq.s32.totalorder %v1389_v16, %v1441_v26 }
  0xdf   : > { %v1453_v1 = vpop.permute.xlu1 %396 }
  0xe0   : > { %vm402_vm5 = vcmp.eq.s32.totalorder %v1394_v29, %v1453_v1  ;;  %vm404_vm6 = vcmp.eq.s32.totalorder %v1405_v20, %v1453_v1  ;;  %vm401_vm11 = vcmp.eq.s32.totalorder %v1389_v16, %v1453_v1 }
  0xe1   : > { %vm412_vm8 = vmor %vm384_vm14, %vm402_vm5 }
  0xe2   : > { %vm440_vm10 = vmor %vm412_vm8, %vm430_vm3  ;;  %vm263_vm3 = vcmp.eq.s32.totalorder %v1473_v31, %v1398_v19 }
  0xe3   : > { %v881_v33 = vsel %vm440_vm10, 1.0, %v1239_v32  ;;  %vm414_vm14 = vmor %vm1445_vm15, %vm404_vm6  ;;  %vm291_vm6 = vcmp.eq.s32.totalorder %v1473_v31, %v1387_v7 }
  0xe4   : > { %v1482_v34 = vpop.permute.xlu1 %315  ;;  %606 = vmatprep.mubr.f32.mxu0 %v881_v33  ;;  %vm442_vm0 = vmor %vm414_vm14, %vm432_vm9  ;;  %vm347_vm9 = vcmp.eq.s32.totalorder %v1473_v31, %v1407_v21 }
  0xe5   : > { %v883_v35 = vsel %vm442_vm0, 1.0, %v1239_v32  ;;  %vm411_vm4 = vmor %vm1461_vm7, %vm401_vm11  ;;  %vm319_vm7 = vcmp.eq.s32.totalorder %v1473_v31, %v1396_v18  ;;  %vm375_vm11 = vcmp.eq.s32.totalorder %v1473_v31, %v1435_v25  ;;  %vm431_vm0 = vcmp.eq.s32.totalorder %v1473_v31, %v1441_v26 }
  0xe6   : > { %vm1493_vm5 = vmor %vm252_vm13, %vm270_vm12  ;;  %681 = vmatprep.mubr.f32.mxu1 %v883_v35  ;;  %vm403_vm12 = vcmp.eq.s32.totalorder %v1473_v31, %v1453_v1 }
  0xe7   : > { %vm439_vm15 = vmor %vm411_vm4, %vm429_vm1  ;;  %vm326_vm4 = vcmp.eq.s32.totalorder %v1466_v30, %v1482_v34 }
  0xe8   : > { %v880_v37 = vsel %vm439_vm15, 1.0, %v1239_v32  ;;  %vm273_vm8 = vmor %vm245_vm2, %vm263_vm3  ;;  %vm298_vm2 = vcmp.eq.s32.totalorder %v1466_v30, %v1431_v23 }
  0xe9   : > { %607 = vmatmul.mubr.f32.vlgmr.msra.gmra.mrb[0].mxu0 %v880_v37  ;;  %vm301_vm10 = vmor %vm273_vm8, %vm291_vm6  ;;  %v1506_v38 = vpop.permute.xlu1 %343  ;;  %vm249_vm6 = vcmp.eq.s32.totalorder %v1394_v29, %v1391_v17  ;;  %vm267_vm8 = vcmp.eq.s32.totalorder %v1394_v29, %v1419_v22 }
  0xea   : > { %vm329_vm13 = vmor %vm301_vm10, %vm319_vm7  ;;  %1052 = vmatpush3.bf16.msra.mxu0 %v1381_v14  ;;  %vm354_vm10 = vcmp.eq.s32.totalorder %v1466_v30, %v1506_v38  ;;  %vm295_vm7 = vcmp.eq.s32.totalorder %v1394_v29, %v1431_v23 }
  0xeb   : > { %vm357_vm14 = vmor %vm329_vm13, %vm347_vm9 }
  0xec   : > { %vm385_vm1 = vmor %vm357_vm14, %vm375_vm11 }
  0xed   : > { %vm413_vm3 = vmor %vm385_vm1, %vm403_vm12  ;;  %vm323_vm12 = vcmp.eq.s32.totalorder %v1394_v29, %v1482_v34 }
  0xee   : > { %vm441_vm15 = vmor %vm413_vm3, %vm431_vm0  ;;  %v1517_v39 = vpop.permute.xlu1 %371 }
  0xef   : > { %v882_v40 = vsel %vm441_vm15, 1.0, %v1239_v32  ;;  %vm308_vm9 = vmor %vm1493_vm5, %vm298_vm2  ;;  %vm351_vm5 = vcmp.eq.s32.totalorder %v1394_v29, %v1506_v38  ;;  %vm382_vm0 = vcmp.eq.s32.totalorder %v1466_v30, %v1517_v39  ;;  %vm379_vm2 = vcmp.eq.s32.totalorder %v1394_v29, %v1517_v39 }
  0xf0   : > { %682 = vmatmul.mubr.f32.vlgmr.msra.gmra.mrb[0].mxu1 %v882_v40  ;;  %vm336_vm11 = vmor %vm308_vm9, %vm326_vm4  ;;  %vm407_vm4 = vcmp.eq.s32.totalorder %v1394_v29, %v1530_v41  ;;  %vm269_vm9 = vcmp.eq.s32.totalorder %v1405_v20, %v1419_v22 }
  0xf1   : > { %vm277_vm13 = vmor %vm249_vm6, %vm267_vm8  ;;  %vm251_vm8 = vcmp.eq.s32.totalorder %v1405_v20, %v1391_v17 }
  0xf2   : > { %vm364_vm14 = vmor %vm336_vm11, %vm354_vm10  ;;  %vm297_vm11 = vcmp.eq.s32.totalorder %v1405_v20, %v1431_v23 }
  0xf3   : > { %v1534_v42 = vpop.permute.xlu1 %427  ;;  %vm305_vm1 = vmor %vm277_vm13, %vm295_vm7 }
  0xf4   : > { %vm333_vm3 = vmor %vm305_vm1, %vm323_vm12  ;;  %vm435_vm6 = vcmp.eq.s32.totalorder %v1394_v29, %v1534_v42 }
  0xf5   : > { %vm361_vm15 = vmor %vm333_vm3, %vm351_vm5  ;;  %vm325_vm5 = vcmp.eq.s32.totalorder %v1405_v20, %v1482_v34  ;;  %vm353_vm3 = vcmp.eq.s32.totalorder %v1405_v20, %v1506_v38 }
  0xf6   : > { %vm1550_vm10 = vmor %vm364_vm14, %vm382_vm0  ;;  %vm381_vm0 = vcmp.eq.s32.totalorder %v1405_v20, %v1517_v39 }
  0xf7   : > { %vm389_vm7 = vmor %vm361_vm15, %vm379_vm2  ;;  %vm409_vm15 = vcmp.eq.s32.totalorder %v1405_v20, %v1530_v41 }
  0xf8   : > { %vm417_vm13 = vmor %vm389_vm7, %vm407_vm4  ;;  %vm248_vm7 = vcmp.eq.s32.totalorder %v1389_v16, %v1391_v17 }
  0xf9   : > { %vm445_vm12 = vmor %vm417_vm13, %vm435_vm6  ;;  %vm437_vm6 = vcmp.eq.s32.totalorder %v1405_v20, %v1534_v42  ;;  %vm410_vm13 = vcmp.eq.s32.totalorder %v1466_v30, %v1530_v41 }
  0xfa   : > { %v886_v44 = vsel %vm445_vm12, 1.0, %v1239_v32  ;;  %vm279_vm1 = vmor %vm251_vm8, %vm269_vm9  ;;  %vm266_vm8 = vcmp.eq.s32.totalorder %v1389_v16, %v1419_v22 }
  0xfb   : > { %611 = vmatprep.mubr.f32.mxu0 %v886_v44  ;;  %vm307_vm14 = vmor %vm279_vm1, %vm297_vm11  ;;  %vm294_vm11 = vcmp.eq.s32.totalorder %v1389_v16, %v1431_v23  ;;  %vm322_vm1 = vcmp.eq.s32.totalorder %v1389_v16, %v1482_v34 }
  0xfc   : > { %vm335_vm2 = vmor %vm307_vm14, %vm325_vm5  ;;  %vm265_vm14 = vcmp.eq.s32.totalorder %v1466_v30, %v1398_v19 }
  0xfd   : > { %vm363_vm4 = vmor %vm335_vm2, %vm353_vm3  ;;  %vm247_vm3 = vcmp.eq.s32.totalorder %v1466_v30, %v1385_v15  ;;  %vm350_vm2 = vcmp.eq.s32.totalorder %v1389_v16, %v1506_v38 }
  0xfe   : > { %vm391_vm9 = vmor %vm363_vm4, %vm381_vm0 }
  0xff   : > { %vm419_vm12 = vmor %vm391_vm9, %vm409_vm15 }
 0x100   : > { %vm447_vm5 = vmor %vm419_vm12, %vm437_vm6  ;;  %vm378_vm6 = vcmp.eq.s32.totalorder %v1389_v16, %v1517_v39  ;;  %vm406_vm12 = vcmp.eq.s32.totalorder %v1389_v16, %v1530_v41 }
 0x101   : > { %v888_v45 = vsel %vm447_vm5, 1.0, %v1239_v32  ;;  %vm276_vm0 = vmor %vm248_vm7, %vm266_vm8  ;;  %vm250_vm8 = vcmp.eq.s32.totalorder %v1473_v31, %v1391_v17 }
 0x102   : > { %vm1586_vm4 = vmor %vm1550_vm10, %vm410_vm13  ;;  %686 = vmatprep.mubr.f32.mxu1 %v888_v45  ;;  %vm434_vm10 = vcmp.eq.s32.totalorder %v1389_v16, %v1534_v42 }
 0x103   : > { %vm304_vm15 = vmor %vm276_vm0, %vm294_vm11  ;;  %vm268_vm11 = vcmp.eq.s32.totalorder %v1473_v31, %v1419_v22 }
 0x104   : > { %vm332_vm9 = vmor %vm304_vm15, %vm322_vm1  ;;  %vm296_vm1 = vcmp.eq.s32.totalorder %v1473_v31, %v1431_v23 }
 0x105   : > { %vm1594_vm5 = vmor %vm247_vm3, %vm265_vm14  ;;  %vm324_vm3 = vcmp.eq.s32.totalorder %v1473_v31, %v1482_v34  ;;  %vm438_vm14 = vcmp.eq.s32.totalorder %v1466_v30, %v1534_v42 }
 0x106   : > { %v1719_v47 = vsel %vm1594_vm5, 4294967295, %v1718_v47  ;;  %vm360_vm7 = vmor %vm332_vm9, %vm350_vm2  ;;  %vm352_vm9 = vcmp.eq.s32.totalorder %v1473_v31, %v1506_v38 }
 0x107   : > { %vm388_vm13 = vmor %vm360_vm7, %vm378_vm6  ;;  %vm380_vm6 = vcmp.eq.s32.totalorder %v1473_v31, %v1517_v39 }
 0x108   : > { %vm416_vm0 = vmor %vm388_vm13, %vm406_vm12  ;;  %vm408_vm12 = vcmp.eq.s32.totalorder %v1473_v31, %v1530_v41 }
 0x109   : > { %vm444_vm15 = vmor %vm416_vm0, %vm434_vm10 }
 0x10a   : > { %v885_v48 = vsel %vm444_vm15, 1.0, %v1239_v32  ;;  %vm278_vm2 = vmor %vm250_vm8, %vm268_vm11  ;;  %vm436_vm8 = vcmp.eq.s32.totalorder %v1473_v31, %v1534_v42 }
 0x10b   : > { %612 = vmatmul.mubr.f32.gmra.mrb[2].mxu0 %v885_v48  ;;  %vm306_vm5 = vmor %vm278_vm2, %vm296_vm1  ;;  %vm293_vm1 = vcmp.eq.s32.totalorder %v1466_v30, %v1387_v7  ;;  %vm377_vm2 = vcmp.eq.s32.totalorder %v1466_v30, %v1435_v25 }
 0x10c   : > { %vm334_vm7 = vmor %vm306_vm5, %vm324_vm3  ;;  %vm349_vm5 = vcmp.eq.s32.totalorder %v1466_v30, %v1407_v21  ;;  %vm321_vm3 = vcmp.eq.s32.totalorder %v1466_v30, %v1396_v18 }
 0x10d   : > { %vm1619_vm10 = vmor %vm1586_vm4, %vm438_vm14  ;;  %vm1722_vm4 = vnez %v1719_v47 }
 0x10e   : > { %vm362_vm13 = vmor %vm334_vm7, %vm352_vm9  ;;  %v889_v53 = vsel %vm1619_vm10, 1.0, %v1239_v32 }
 0x10f   : > { %vm390_vm11 = vmor %vm362_vm13, %vm380_vm6  ;;  %vm405_vm6 = vcmp.eq.s32.totalorder %v1466_v30, %v1453_v1 }
 0x110   : > { %vm418_vm0 = vmor %vm390_vm11, %vm408_vm12  ;;  %vm433_vm12 = vcmp.eq.s32.totalorder %v1466_v30, %v1441_v26  ;;  %vm535_vm11 = vcmask 130048  }
 0x111   : > { %vm446_vm15 = vmor %vm418_vm0, %vm436_vm8 }
 0x112   : > { %v887_v51 = vsel %vm446_vm15, 1.0, %v1239_v32  ;;  %vm303_vm14 = vmor %vm1722_vm4, %vm293_vm1 }
 0x113   : > { %687 = vmatmul.mubr.f32.gmra.mrb[2].mxu1 %v887_v51  ;;  %vm331_vm9 = vmor %vm303_vm14, %vm321_vm3 }
 0x114   : > { %vm359_vm7 = vmor %vm331_vm9, %vm349_vm5 }
 0x115   : > { %vm387_vm13 = vmor %vm359_vm7, %vm377_vm2 }
 0x116   : > { %vm415_vm8 = vmor %vm387_vm13, %vm405_vm6 }
 0x117   : > { %vm443_vm0 = vmor %vm415_vm8, %vm433_vm12 }
 0x118   : > { %v884_v52 = vsel %vm443_vm0, 1.0, %v1239_v32 }
 0x119   : > { %982 = vmatprep.mubr.msk.f32.mxu0 %vm535_vm11, %v884_v52 }
 0x11a   : > { %983 = vmatmul.mubr.msk.f32.vlgmr.msra.gmra.mrb[4].mxu0 %vm535_vm11, %v889_v53 }
 0x1bc   : > { %v930_v54 = vpop.f32.mrb[0].mxu0 }
 0x1bd   : > { %v931_v55 = vpop.f32.mrb[1].mxu0 }
 0x1be   : > { %v932_v56 = vadd.f32 %v931_v55, %v930_v54 }
 0x1c3   : > { %v968_v57 = vpop.f32.mrb[0].mxu1 }
 0x1c4   : > { %v969_v58 = vpop.f32.mrb[1].mxu1 }
 0x1c5   : > { %v970_v59 = vadd.f32 %v969_v58, %v968_v57 }
 0x1c7   : > { %v684_v60 = vadd.f32 %v970_v59, %v932_v56 }
 0x1de   : > { %v933_v61 = vpop.f32.mrb[2].mxu0 }
 0x1df   : > { %v934_v62 = vpop.f32.mrb[3].mxu0 }
 0x1e0   : > { %v935_v24 = vadd.f32 %v934_v62, %v933_v61 }
 0x1e6   : > { %v971_v63 = vpop.f32.mrb[2].mxu1 }
 0x1e7   : > { %v972_v0 = vpop.f32.mrb[3].mxu1 }
 0x1e8   : > { %v973_v2 = vadd.f32 %v972_v0, %v971_v63 }
 0x1ea   : > { %v689_v3 = vadd.f32 %v973_v2, %v935_v24 }
 0x1ed   : > { %v984_v4 = vpop.f32.mrb[4].mxu0 }
 0x1ee   : > { %v764_v5 = vadd.f32 %v984_v4, %v689_v3  ;;  %v758_v6 = vpop.f32.mrb[5].mxu0 }
 0x1ef   : > { %v759_v8 = vadd.f32 %v758_v6, %v684_v60 }
 0x1f0   : > { %768 = vst [vmem:[%s195_s5 + $0x8] sm:$0xff] %v764_v5 }
 0x1f1   : > { %767 = vst [vmem:[%s195_s5] sm:$0xff] %v759_v8 }
 0x1f2   : > { %1173 = shalt.err (!%p1170_p7)
}
 0x1f3   : > { %s1174_s25 = scalar_lea.hbm %s1651_s10, 256  ;;  %s1178_s27 = scalar_lea.hbm %s1697_s3, 512 }
 0x1f4   : > { %p1175_p8 = scmp.ne.s32.totalorder %s1651_s10, %s1174_s25  ;;  %p1179_p1 = scmp.lt.u32.totalorder %s1651_s10, %s1697_s3 }
 0x1f5   : > { %p1180_p0 = scmp.lt.u32.totalorder %s1178_s27, %s1174_s25  ;;  %p1182_p6 = scmp.lt.u32.totalorder %s1174_s25, %s1651_s10 }
 0x1f6   : > { %p1176_p11 = pnand %p1175_p8, %p1723_p9 }
 0x1f7   : > { %p1181_p5 = por %p1180_p0, %p1179_p1 }
 0x1f8   : > { %p1177_p13 = pneg %p1176_p11 }
 0x1f9   : > { %p1183_p10 = por %p1182_p6, %p1181_p5 }
 0x1fb   : > { %p1184_p12 = pnand %p1183_p10, %p1177_p13 }
 0x1fd   : > { %1187 = shalt.err (!%p1184_p12)
}
 0x1fe   : > { %s1241_s30 = smov 128   ;;  %s1242_s4 = smov 8  }
 0x1ff   : > { %1057 = dma.vmem_to_hbm [thread:$0]  (%p1723_p9), %s1646_s6, 256, %s1651_s10, %s1653_s11, %s1241_s30, %s1241_s30, %s1242_s4  }
 0x200 PF: > { %p1069_p2 = scmp.ge.s32.totalorder %s1226_s15, 2  ;;  %s798_s5 = sand.u32 1, %s1214_s12  }
 0x201   : > { %p1724_p3 = scmp.ne.s32.totalorder %s1702_s23, 0  ;;  %s799_s7 = scalar_lea.sflag [#allocation4], %s798_s5 }
 0x203   : > { %p1064_p4 = pnand %p1069_p2, %p1724_p3 }
 0x205   : > { %1209 = dma.done.wait (!%p1064_p4), %s799_s7, 256  }
 0x206   : > { %1211 = vsyncadd (!%p1064_p4), %s799_s7, 4294967040  ;;  %p14_p7 = scmp.ge.s32.totalorder %s1288_s18, 4   ;;  %s1725_s12 = smov %s1218_s13 }
 0x207   : > { %s1726_s13 = smov %s1222_s14  ;;  %s1727_s14 = smov %s1299_s21 }
 0x208   : > { %s1728_s15 = smov %s1288_s18  ;;  %16 = sbr.rel (!%p14_p7) target bundleno = 4 (0x4), region = 75 }
 0x20f   :  { %804 = vsyncpa [#allocation3], 1 }
 0x210   :  { %806 = vsyncpa [#allocation3 + $0x1], 1 }
 0x211   :  { %807 = vsyncpa [#allocation4], 1 }
 0x212   :  { %809 = vsyncpa [#allocation4 + $0x1], 1 }

</bundles_post_ra>
